<compile_context>
chip_gen: v6e
topology: v6e:2x2x1
jax: 0.10.0
libtpu: 0.0.40
codegen_flags: <defaults>
</compile_context>

<pallas_src>
import jax
import jax.numpy as jnp
from jax.experimental import pallas as pl
from jax.experimental.pallas import tpu as pltpu

F32 = jnp.float32
LANE = 128          # TPU lane width (row tiles along the lane axis must be multiples of this)
KENN_K_CHUNK = 8    # clauses processed per chunk inside a KENN layer (caps live vregs)


# ---------------------------------------------------------------------------
# Fused Pallas kernel (built per architecture: num_hidden linear+BN+relu layers,
# one final linear, num_kenn KENN unary-enhancement layers).  Feature-major layout.
# ---------------------------------------------------------------------------
def _make_fused_kernel(num_hidden, num_kenn, num_clauses, matmul_dtype):
    def kernel(*refs):
        # refs layout (inputs in call order, then the output ref):
        #   x_ref,                               # [in_f, tn]  (matmul dtype, rows on lanes)
        #   (w_ref, b_ref) * num_hidden          # BN-folded, torch layout [out, in]; b [out, 1]
        #   w_last_ref, b_last_ref,
        #   signs_ref,                           # [K, C] clause literal signs in {-1,0,+1}
        #   ws_ref * num_kenn,                   # [K, C] clause_weight * signs per KENN layer
        #   o_ref                                # [C, tn] (transposed output, lane-dense)
        idx = 0
        x_ref = refs[idx]; idx += 1
        h = x_ref[...]                                           # [in_f, tn]

        # Hidden stack: h' = relu(W_eff @ h + b_eff)   (BN folded, dropout = identity in eval)
        # bf16 at the MXU inputs, f32 accumulation; elementwise (bias/relu) in f32.
        for _ in range(num_hidden):
            w_ref = refs[idx]; b_ref = refs[idx + 1]; idx += 2
            a = jnp.dot(w_ref[...], h, preferred_element_type=jnp.float32) + b_ref[...]
            h = jnp.maximum(a, 0.0).astype(matmul_dtype)

        # Final linear -> z^T  [C, tn]  (f32)
        w_ref = refs[idx]; b_ref = refs[idx + 1]; idx += 2
        z = jnp.dot(w_ref[...], h, preferred_element_type=jnp.float32) + b_ref[...]

        # KENN unary clause enhancement, lane-dense: all tensors are [k, C, tn] so the
        # softmax max/sum over clause literals is a sublane reduce; rows stay on lanes.
        signs_ref = refs[idx]; idx += 1
        s = signs_ref[...][:, :, None]                           # [K, C, 1]
        active = s != 0.0                                        # literal-in-clause mask
        neg_big = jnp.float32(-1e30)

        for _ in range(num_kenn):
            ws_ref = refs[idx]; idx += 1
            ws = ws_ref[...][:, :, None]                         # [K, C, 1] = clause_w * signs
            delta = jnp.zeros_like(z)                            # [C, tn]
            # chunk the clause axis so large K doesn't spill the vreg file
            for k0 in range(0, num_clauses, KENN_K_CHUNK):
                k1 = min(num_clauses, k0 + KENN_K_CHUNK)
                sk, ak, wk = s[k0:k1], active[k0:k1], ws[k0:k1]
                logits = jnp.where(ak, sk * z[None, :, :], neg_big)   # [kc, C, tn]
                m = jnp.max(logits, axis=1, keepdims=True)            # [kc, 1, tn]
                e = jnp.where(ak, jnp.exp(logits - m), 0.0)           # [kc, C, tn]
                sum_e = jnp.sum(e, axis=1, keepdims=True)             # [kc, 1, tn]
                # empty-clause guard: sum_e == 0 -> e == 0 everywhere -> p == 0 (no NaN)
                safe = jnp.where(sum_e > 0.0, sum_e, 1.0)
                p = e * pl.reciprocal(safe, approx=False)             # exact; EUP slot
                delta = delta + jnp.sum(wk * p, axis=0)               # [C, tn]
            z = z + delta

        o_ref = refs[idx]
        o_ref[...] = z                                           # lane-dense store

    return kernel


# ---------------------------------------------------------------------------
# Host-side parameter constant-folding: BatchNorm into torch-layout weights,
# cast to the matmul dtype; biases become [out, 1] columns (feature-major).
# ---------------------------------------------------------------------------
def _fold_bn_feature_major(lins, bns, matmul_dtype):
    folded = []
    for (w, b), (sc, sh) in zip(lins[:-1], bns):
        # y = sc*(x @ W^T + b) + sh   ->   y^T = (sc_col * W) @ x^T + (sc*b + sh)^T
        w_eff = (w * sc.reshape(-1, 1)).astype(matmul_dtype)     # [out, in]
        b_eff = (b * sc + sh).reshape(-1, 1).astype(F32)         # [out, 1]
        folded.append((w_eff, b_eff))
    w, b = lins[-1]
    folded.append((w.astype(matmul_dtype), b.reshape(-1, 1).astype(F32)))   # final: no BN
    return folded


# ---------------------------------------------------------------------------
# Wrapper: single fused pallas_call, row axis tiled along lanes (weights VMEM-resident)
# ---------------------------------------------------------------------------
def kenn_mlp_forward(x, edge_index, lins, bns, signs, kenn_weights, *,
                     row_tile=512, matmul_dtype=jnp.bfloat16):
    # TODO(synk): edge_index only feeds the relational (binary) enhancement path,
    # which is a no-op with relations=None / edge_weight=None.
    del edge_index

    n, in_f = x.shape
    out_f = lins[-1][0].shape[0]
    num_hidden = len(lins) - 1
    num_kenn = len(kenn_weights)
    num_clauses = signs.shape[0]

    folded = _fold_bn_feature_major(lins, bns, matmul_dtype)
    # Precompute clause_weight * signs on the host (one [K, C] tensor per KENN layer).
    ws_list = [(cw * signs).astype(F32) for cw in kenn_weights]

    # Feature-major input: rows on the lane axis (lane-dense loads).
    x_t = x.T.astype(matmul_dtype)                               # [in_f, n]

    # Row-tile selection: lane-axis blocking must be a multiple of 128 (or the full extent).
    # Ensure >=2 grid steps when possible so dimension_semantics=("parallel",) can shard
    # the row axis across v7x's two TensorCores.  On v7x (64 MiB VMEM) with large hidden
    # dims, reduce row_tile accordingly.
    if n <= LANE:
        tn = n
    else:
        tn = min(max(LANE, (row_tile // LANE) * LANE), LANE * pl.cdiv(n, LANE))
        if pl.cdiv(n, tn) < 2:
            tn = LANE * pl.cdiv(pl.cdiv(n, 2), LANE)
    grid = (pl.cdiv(n, tn),)
    # NOTE: if n is not a multiple of tn, the pad lanes of the last block run through
    # exp() on unspecified data; lanes are independent and pad lanes are never written
    # back, so the result is correct.

    invariant = pl.Buffered(1)   # grid-invariant operands: no double-buffering
    in_specs = [pl.BlockSpec((in_f, tn), lambda i: (0, i))]
    args = [x_t]
    param_arrays = []
    for w_eff, b_eff in folded:
        in_specs.append(pl.BlockSpec(w_eff.shape, lambda i: (0, 0), pipeline_mode=invariant))
        in_specs.append(pl.BlockSpec(b_eff.shape, lambda i: (0, 0), pipeline_mode=invariant))
        args += [w_eff, b_eff]
        param_arrays += [w_eff, b_eff]
    in_specs.append(pl.BlockSpec(signs.shape, lambda i: (0, 0), pipeline_mode=invariant))
    args.append(signs)
    param_arrays.append(signs)
    for ws in ws_list:
        in_specs.append(pl.BlockSpec(ws.shape, lambda i: (0, 0), pipeline_mode=invariant))
        args.append(ws)
        param_arrays.append(ws)

    # Explicit VMEM budget: double-buffered x/out tiles + single-buffered params + an
    # estimate of in-kernel temporaries, with margin; clamped to v7x's 64 MiB per-TC VMEM.
    itemsize = jnp.dtype(matmul_dtype).itemsize
    max_width = max([w.shape[0] for w, _ in folded] + [in_f])
    io_bytes = 2 * in_f * tn * itemsize + 2 * out_f * tn * 4
    param_bytes = sum(int(a.size) * jnp.dtype(a.dtype).itemsize for a in param_arrays)
    kc = min(num_clauses, KENN_K_CHUNK)
    tmp_bytes = 4 * max_width * tn * 4 + 4 * kc * out_f * tn * 4
    vmem_limit = int(1.5 * (io_bytes + param_bytes + tmp_bytes)) + (4 << 20)
    vmem_limit = max(16 << 20, min(vmem_limit, 64 << 20))

    kernel = _make_fused_kernel(num_hidden, num_kenn, num_clauses, matmul_dtype)
    out_t = pl.pallas_call(
        kernel,
        out_shape=jax.ShapeDtypeStruct((out_f, n), F32),        # transposed, lane-dense
        grid=grid,
        in_specs=in_specs,
        out_specs=pl.BlockSpec((out_f, tn), lambda i: (0, i)),
        compiler_params=pltpu.CompilerParams(
            dimension_semantics=("parallel",),   # shards row blocks across TCs on v7x
            vmem_limit_bytes=vmem_limit,
        ),
    )(*args)
    return out_t.T                                               # back to module layout [N, C]


# ---------------------------------------------------------------------------
# Parameter construction (deterministic, PyTorch-style init)
# ---------------------------------------------------------------------------
def _torch_linear_init(key, out_f, in_f):
    kw, kb = jax.random.split(key)
    bound = 1.0 / jnp.sqrt(jnp.float32(in_f))
    w = jax.random.uniform(kw, (out_f, in_f), F32, -bound, bound)
    b = jax.random.uniform(kb, (1, out_f), F32, -bound, bound)
    return w, b


def make_params(key, in_channels, hidden_channels, out_channels, num_layers,
                num_kenn_layers, num_clauses):
    keys = jax.random.split(key, num_layers + 1)
    lins = []
    dims = [in_channels] + [hidden_channels] * (num_layers - 1) + [out_channels]
    for i in range(num_layers):
        lins.append(_torch_linear_init(keys[i], dims[i + 1], dims[i]))

    # BatchNorm1d at init (eval mode): mean=0, var=1, gamma=1, beta=0, eps=1e-5
    eps = 1e-5
    bn_scale = jnp.full((1, hidden_channels), 1.0 / jnp.sqrt(1.0 + eps), F32)
    bn_shift = jnp.zeros((1, hidden_channels), F32)
    bns = [(bn_scale, bn_shift)] * (num_layers - 1)

    # Synthetic clause structure (deterministic stand-in for the knowledge_file parse):
    # clause k, class c has sign +1 / -1 / 0 by a fixed pattern; every clause non-empty.
    c_idx = jnp.arange(out_channels)
    signs_rows = []
    for k in range(num_clauses):
        m = (c_idx + k) % 3
        row = jnp.where(m == 0, 1.0, jnp.where(m == 1, -1.0, 0.0)).astype(F32)
        signs_rows.append(row)
    signs = jnp.stack(signs_rows, axis=0)                        # [K, C]
    # KENN default clause-weight init is 0.5
    kenn_weights = [jnp.full((num_clauses, 1), 0.5, F32) for _ in range(num_kenn_layers)]
    return lins, bns, signs, kenn_weights


# ---------------------------------------------------------------------------
# Plain-JAX reference (row-major, unfused math, exact softmax).  Uses the same
# bf16-at-the-matmul precision policy as the kernel so the tolerance stays tight;
# the eval-mode torch module differs from this only by bf16 rounding at the dots.
# ---------------------------------------------------------------------------
def _reference(x, lins, bns, signs, kenn_weights, matmul_dtype=jnp.bfloat16):
    md = matmul_dtype
    h = x
    for (w, b), (sc, sh) in zip(lins[:-1], bns):
        w_eff = (w * sc.reshape(-1, 1)).astype(md)               # same BN-folded weights
        b_eff = b * sc + sh
        a = jnp.dot(h.astype(md), w_eff.T, preferred_element_type=jnp.float32) + b_eff
        h = jnp.maximum(a, 0.0)
    w, b = lins[-1]
    z = jnp.dot(h.astype(md), w.astype(md).T, preferred_element_type=jnp.float32) + b
    for cw in kenn_weights:
        delta = jnp.zeros_like(z)
        for k in range(signs.shape[0]):
            sk = signs[k:k + 1, :]
            logits = jnp.where(sk != 0, sk * z, -jnp.inf)
            p = jax.nn.softmax(logits, axis=-1)
            p = jnp.where(sk != 0, p, 0.0)
            delta = delta + cw[k, 0] * sk * p
        z = z + delta
    return z


if __name__ == "__main__":
    # Small shapes consistent with the module (graph-node classifier); N=256 so the row
    # grid has 2 steps (exercises the "parallel" row axis / both v7x TensorCores).
    N = 256               # nodes / batch
    IN_CH, HID_CH, OUT_CH = 16, 32, 8
    NUM_LAYERS = 3
    NUM_KENN_LAYERS = 2
    NUM_CLAUSES = 3

    key = jax.random.PRNGKey(0)
    kx, kp = jax.random.split(key)
    x = jax.random.normal(kx, (N, IN_CH), dtype=F32)
    edge_index = jnp.stack(
        [jnp.arange(N, dtype=jnp.int32), (jnp.arange(N, dtype=jnp.int32) + 1) % N]
    )  # [2, E] — unused (relational path not implemented)

    lins, bns, signs, kenn_w = make_params(
        kp, IN_CH, HID_CH, OUT_CH, NUM_LAYERS, NUM_KENN_LAYERS, NUM_CLAUSES
    )

    z = kenn_mlp_forward(x, edge_index, lins, bns, signs, kenn_w)
    z = jax.block_until_ready(z)

    z_ref = _reference(x, lins, bns, signs, kenn_w, jnp.bfloat16)
    assert z.shape == (N, OUT_CH)
    assert jnp.allclose(z, z_ref, atol=2e-3, rtol=2e-3), "mismatch vs JAX reference"
    print("KERNEL_OK")
</pallas_src>

<mosaic_0001>
module attributes {stable_mosaic.version = 11 : i64} {
  func.func @kernel(%arg0: i32, %arg1: memref<16x128xbf16, #tpu.memory_space<vmem>>, %arg2: memref<32x16xbf16, #tpu.memory_space<vmem>>, %arg3: memref<32x1xf32, #tpu.memory_space<vmem>>, %arg4: memref<32x32xbf16, #tpu.memory_space<vmem>>, %arg5: memref<32x1xf32, #tpu.memory_space<vmem>>, %arg6: memref<8x32xbf16, #tpu.memory_space<vmem>>, %arg7: memref<8x1xf32, #tpu.memory_space<vmem>>, %arg8: memref<3x8xf32, #tpu.memory_space<vmem>>, %arg9: memref<3x8xf32, #tpu.memory_space<vmem>>, %arg10: memref<3x8xf32, #tpu.memory_space<vmem>>, %arg11: memref<8x128xf32, #tpu.memory_space<vmem>>) attributes {dimension_semantics = [#tpu.dimension_semantics<parallel>], iteration_bounds = array<i64: 2>, scalar_prefetch = 0 : i64, scratch_operands = 0 : i64, tpu.core_type = #tpu.core_type<tc>, window_params = [{transform_indices = @transform_0, window_bounds = array<i64: 16, 128>}, {pipeline_mode = #tpu.pipeline_mode<synchronous>, transform_indices = @transform_1, window_bounds = array<i64: 32, 16>}, {pipeline_mode = #tpu.pipeline_mode<synchronous>, transform_indices = @transform_2, window_bounds = array<i64: 32, 1>}, {pipeline_mode = #tpu.pipeline_mode<synchronous>, transform_indices = @transform_3, window_bounds = array<i64: 32, 32>}, {pipeline_mode = #tpu.pipeline_mode<synchronous>, transform_indices = @transform_4, window_bounds = array<i64: 32, 1>}, {pipeline_mode = #tpu.pipeline_mode<synchronous>, transform_indices = @transform_5, window_bounds = array<i64: 8, 32>}, {pipeline_mode = #tpu.pipeline_mode<synchronous>, transform_indices = @transform_6, window_bounds = array<i64: 8, 1>}, {pipeline_mode = #tpu.pipeline_mode<synchronous>, transform_indices = @transform_7, window_bounds = array<i64: 3, 8>}, {pipeline_mode = #tpu.pipeline_mode<synchronous>, transform_indices = @transform_8, window_bounds = array<i64: 3, 8>}, {pipeline_mode = #tpu.pipeline_mode<synchronous>, transform_indices = @transform_9, window_bounds = array<i64: 3, 8>}, {transform_indices = @transform_10, window_bounds = array<i64: 8, 128>}]} {
    %c0 = arith.constant 0 : index
    %c0_0 = arith.constant 0 : index
    %0 = vector.load %arg1[%c0, %c0_0] : memref<16x128xbf16, #tpu.memory_space<vmem>>, vector<16x128xbf16>
    %c0_1 = arith.constant 0 : index
    %c0_2 = arith.constant 0 : index
    %1 = vector.load %arg2[%c0_1, %c0_2] : memref<32x16xbf16, #tpu.memory_space<vmem>>, vector<32x16xbf16>
    %cst = arith.constant dense<0.000000e+00> : vector<32x128xf32>
    %2 = tpu.matmul %1, %0, %cst {dimension_numbers = #tpu.dot_dimension_numbers<[1], [0], [0], [1], [0, 0, 1, 1], [], []>} : vector<32x16xbf16>, vector<16x128xbf16>, vector<32x128xf32> -> vector<32x128xf32>
    %c0_3 = arith.constant 0 : index
    %c0_4 = arith.constant 0 : index
    %3 = vector.load %arg3[%c0_3, %c0_4] : memref<32x1xf32, #tpu.memory_space<vmem>>, vector<32x1xf32>
    %4 = vector.broadcast %3 : vector<32x1xf32> to vector<32x128xf32>
    %5 = arith.addf %2, %4 : vector<32x128xf32>
    %cst_5 = arith.constant 0.000000e+00 : f32
    %6 = vector.broadcast %cst_5 : f32 to vector<32x128xf32>
    %7 = arith.maximumf %5, %6 : vector<32x128xf32>
    %8 = arith.truncf %7 : vector<32x128xf32> to vector<32x128xbf16>
    %c0_6 = arith.constant 0 : index
    %c0_7 = arith.constant 0 : index
    %9 = vector.load %arg4[%c0_6, %c0_7] : memref<32x32xbf16, #tpu.memory_space<vmem>>, vector<32x32xbf16>
    %cst_8 = arith.constant dense<0.000000e+00> : vector<32x128xf32>
    %10 = tpu.matmul %9, %8, %cst_8 {dimension_numbers = #tpu.dot_dimension_numbers<[1], [0], [0], [1], [0, 0, 1, 1], [], []>} : vector<32x32xbf16>, vector<32x128xbf16>, vector<32x128xf32> -> vector<32x128xf32>
    %c0_9 = arith.constant 0 : index
    %c0_10 = arith.constant 0 : index
    %11 = vector.load %arg5[%c0_9, %c0_10] : memref<32x1xf32, #tpu.memory_space<vmem>>, vector<32x1xf32>
    %12 = vector.broadcast %11 : vector<32x1xf32> to vector<32x128xf32>
    %13 = arith.addf %10, %12 : vector<32x128xf32>
    %cst_11 = arith.constant 0.000000e+00 : f32
    %14 = vector.broadcast %cst_11 : f32 to vector<32x128xf32>
    %15 = arith.maximumf %13, %14 : vector<32x128xf32>
    %16 = arith.truncf %15 : vector<32x128xf32> to vector<32x128xbf16>
    %c0_12 = arith.constant 0 : index
    %c0_13 = arith.constant 0 : index
    %17 = vector.load %arg6[%c0_12, %c0_13] : memref<8x32xbf16, #tpu.memory_space<vmem>>, vector<8x32xbf16>
    %cst_14 = arith.constant dense<0.000000e+00> : vector<8x128xf32>
    %18 = tpu.matmul %17, %16, %cst_14 {dimension_numbers = #tpu.dot_dimension_numbers<[1], [0], [0], [1], [0, 0, 1, 1], [], []>} : vector<8x32xbf16>, vector<32x128xbf16>, vector<8x128xf32> -> vector<8x128xf32>
    %c0_15 = arith.constant 0 : index
    %c0_16 = arith.constant 0 : index
    %19 = vector.load %arg7[%c0_15, %c0_16] : memref<8x1xf32, #tpu.memory_space<vmem>>, vector<8x1xf32>
    %20 = vector.broadcast %19 : vector<8x1xf32> to vector<8x128xf32>
    %21 = arith.addf %18, %20 : vector<8x128xf32>
    %c0_17 = arith.constant 0 : index
    %c0_18 = arith.constant 0 : index
    %22 = vector.load %arg8[%c0_17, %c0_18] : memref<3x8xf32, #tpu.memory_space<vmem>>, vector<3x8xf32>
    %23 = vector.shape_cast %22 : vector<3x8xf32> to vector<3x8x1xf32>
    %cst_19 = arith.constant 0.000000e+00 : f32
    %24 = vector.broadcast %cst_19 : f32 to vector<3x8x1xf32>
    %25 = arith.cmpf one, %23, %24 : vector<3x8x1xf32>
    %c0_20 = arith.constant 0 : index
    %c0_21 = arith.constant 0 : index
    %26 = vector.load %arg9[%c0_20, %c0_21] : memref<3x8xf32, #tpu.memory_space<vmem>>, vector<3x8xf32>
    %27 = vector.shape_cast %26 : vector<3x8xf32> to vector<3x8x1xf32>
    %cst_22 = arith.constant 0.000000e+00 : f32
    %28 = vector.broadcast %cst_22 : f32 to vector<8x128xf32>
    %29 = vector.shape_cast %21 : vector<8x128xf32> to vector<1x8x128xf32>
    %30 = vector.broadcast %23 : vector<3x8x1xf32> to vector<3x8x128xf32>
    %31 = vector.broadcast %29 : vector<1x8x128xf32> to vector<3x8x128xf32>
    %32 = arith.mulf %30, %31 : vector<3x8x128xf32>
    %cst_23 = arith.constant -1.000000e+30 : f32
    %33 = vector.shape_cast %25 : vector<3x8x1xi1> to vector<3x8x1xi1>
    %34 = vector.broadcast %33 : vector<3x8x1xi1> to vector<3x8x128xi1>
    %35 = vector.broadcast %cst_23 : f32 to vector<3x8x128xf32>
    %36 = arith.select %34, %32, %35 : vector<3x8x128xi1>, vector<3x8x128xf32>
    %cst_24 = arith.constant dense<0xFF800000> : vector<3x128xf32>
    %37 = vector.multi_reduction <maximumf>, %36, %cst_24 [1] : vector<3x8x128xf32> to vector<3x128xf32>
    %38 = vector.shape_cast %37 : vector<3x128xf32> to vector<3x1x128xf32>
    %39 = vector.broadcast %38 : vector<3x1x128xf32> to vector<3x8x128xf32>
    %40 = arith.subf %36, %39 : vector<3x8x128xf32>
    %41 = math.exp %40 : vector<3x8x128xf32>
    %cst_25 = arith.constant 0.000000e+00 : f32
    %42 = vector.shape_cast %25 : vector<3x8x1xi1> to vector<3x8x1xi1>
    %43 = vector.broadcast %42 : vector<3x8x1xi1> to vector<3x8x128xi1>
    %44 = vector.broadcast %cst_25 : f32 to vector<3x8x128xf32>
    %45 = arith.select %43, %41, %44 : vector<3x8x128xi1>, vector<3x8x128xf32>
    %cst_26 = arith.constant dense<0.000000e+00> : vector<3x128xf32>
    %46 = vector.multi_reduction <add>, %45, %cst_26 [1] : vector<3x8x128xf32> to vector<3x128xf32>
    %47 = vector.shape_cast %46 : vector<3x128xf32> to vector<3x1x128xf32>
    %cst_27 = arith.constant 0.000000e+00 : f32
    %48 = vector.broadcast %cst_27 : f32 to vector<3x1x128xf32>
    %49 = arith.cmpf ogt, %47, %48 : vector<3x1x128xf32>
    %cst_28 = arith.constant 1.000000e+00 : f32
    %50 = vector.broadcast %cst_28 : f32 to vector<3x1x128xf32>
    %51 = arith.select %49, %47, %50 : vector<3x1x128xi1>, vector<3x1x128xf32>
    %52 = tpu.reciprocal %51 : vector<3x1x128xf32> -> vector<3x1x128xf32>
    %53 = vector.broadcast %52 : vector<3x1x128xf32> to vector<3x8x128xf32>
    %54 = arith.mulf %45, %53 : vector<3x8x128xf32>
    %55 = vector.broadcast %27 : vector<3x8x1xf32> to vector<3x8x128xf32>
    %56 = arith.mulf %55, %54 : vector<3x8x128xf32>
    %cst_29 = arith.constant dense<0.000000e+00> : vector<8x128xf32>
    %57 = vector.multi_reduction <add>, %56, %cst_29 [0] : vector<3x8x128xf32> to vector<8x128xf32>
    %58 = arith.addf %28, %57 : vector<8x128xf32>
    %59 = arith.addf %21, %58 : vector<8x128xf32>
    %c0_30 = arith.constant 0 : index
    %c0_31 = arith.constant 0 : index
    %60 = vector.load %arg10[%c0_30, %c0_31] : memref<3x8xf32, #tpu.memory_space<vmem>>, vector<3x8xf32>
    %61 = vector.shape_cast %60 : vector<3x8xf32> to vector<3x8x1xf32>
    %cst_32 = arith.constant 0.000000e+00 : f32
    %62 = vector.broadcast %cst_32 : f32 to vector<8x128xf32>
    %63 = vector.shape_cast %59 : vector<8x128xf32> to vector<1x8x128xf32>
    %64 = vector.broadcast %23 : vector<3x8x1xf32> to vector<3x8x128xf32>
    %65 = vector.broadcast %63 : vector<1x8x128xf32> to vector<3x8x128xf32>
    %66 = arith.mulf %64, %65 : vector<3x8x128xf32>
    %cst_33 = arith.constant -1.000000e+30 : f32
    %67 = vector.shape_cast %25 : vector<3x8x1xi1> to vector<3x8x1xi1>
    %68 = vector.broadcast %67 : vector<3x8x1xi1> to vector<3x8x128xi1>
    %69 = vector.broadcast %cst_33 : f32 to vector<3x8x128xf32>
    %70 = arith.select %68, %66, %69 : vector<3x8x128xi1>, vector<3x8x128xf32>
    %cst_34 = arith.constant dense<0xFF800000> : vector<3x128xf32>
    %71 = vector.multi_reduction <maximumf>, %70, %cst_34 [1] : vector<3x8x128xf32> to vector<3x128xf32>
    %72 = vector.shape_cast %71 : vector<3x128xf32> to vector<3x1x128xf32>
    %73 = vector.broadcast %72 : vector<3x1x128xf32> to vector<3x8x128xf32>
    %74 = arith.subf %70, %73 : vector<3x8x128xf32>
    %75 = math.exp %74 : vector<3x8x128xf32>
    %cst_35 = arith.constant 0.000000e+00 : f32
    %76 = vector.shape_cast %25 : vector<3x8x1xi1> to vector<3x8x1xi1>
    %77 = vector.broadcast %76 : vector<3x8x1xi1> to vector<3x8x128xi1>
    %78 = vector.broadcast %cst_35 : f32 to vector<3x8x128xf32>
    %79 = arith.select %77, %75, %78 : vector<3x8x128xi1>, vector<3x8x128xf32>
    %cst_36 = arith.constant dense<0.000000e+00> : vector<3x128xf32>
    %80 = vector.multi_reduction <add>, %79, %cst_36 [1] : vector<3x8x128xf32> to vector<3x128xf32>
    %81 = vector.shape_cast %80 : vector<3x128xf32> to vector<3x1x128xf32>
    %cst_37 = arith.constant 0.000000e+00 : f32
    %82 = vector.broadcast %cst_37 : f32 to vector<3x1x128xf32>
    %83 = arith.cmpf ogt, %81, %82 : vector<3x1x128xf32>
    %cst_38 = arith.constant 1.000000e+00 : f32
    %84 = vector.broadcast %cst_38 : f32 to vector<3x1x128xf32>
    %85 = arith.select %83, %81, %84 : vector<3x1x128xi1>, vector<3x1x128xf32>
    %86 = tpu.reciprocal %85 : vector<3x1x128xf32> -> vector<3x1x128xf32>
    %87 = vector.broadcast %86 : vector<3x1x128xf32> to vector<3x8x128xf32>
    %88 = arith.mulf %79, %87 : vector<3x8x128xf32>
    %89 = vector.broadcast %61 : vector<3x8x1xf32> to vector<3x8x128xf32>
    %90 = arith.mulf %89, %88 : vector<3x8x128xf32>
    %cst_39 = arith.constant dense<0.000000e+00> : vector<8x128xf32>
    %91 = vector.multi_reduction <add>, %90, %cst_39 [0] : vector<3x8x128xf32> to vector<8x128xf32>
    %92 = arith.addf %62, %91 : vector<8x128xf32>
    %93 = arith.addf %59, %92 : vector<8x128xf32>
    %c0_40 = arith.constant 0 : index
    %c0_41 = arith.constant 0 : index
    %94 = vector.load %arg11[%c0_40, %c0_41] : memref<8x128xf32, #tpu.memory_space<vmem>>, vector<8x128xf32>
    tpu.vector_store %arg11[%c0_40, %c0_41], %93 {strides = array<i32>} : memref<8x128xf32, #tpu.memory_space<vmem>>, vector<8x128xf32>,
    return
  }
  func.func @transform_0(%arg0: i32) -> (i32, i32) {
    %c0_i32 = arith.constant 0 : i32
    %c0_i32_0 = arith.constant 0 : i32
    return %c0_i32, %arg0 : i32, i32
  }
  func.func @transform_1(%arg0: i32) -> (i32, i32) {
    %c0_i32 = arith.constant 0 : i32
    %c0_i32_0 = arith.constant 0 : i32
    %c0_i32_1 = arith.constant 0 : i32
    return %c0_i32, %c0_i32_0 : i32, i32
  }
  func.func @transform_2(%arg0: i32) -> (i32, i32) {
    %c0_i32 = arith.constant 0 : i32
    %c0_i32_0 = arith.constant 0 : i32
    %c0_i32_1 = arith.constant 0 : i32
    return %c0_i32, %c0_i32_0 : i32, i32
  }
  func.func @transform_3(%arg0: i32) -> (i32, i32) {
    %c0_i32 = arith.constant 0 : i32
    %c0_i32_0 = arith.constant 0 : i32
    %c0_i32_1 = arith.constant 0 : i32
    return %c0_i32, %c0_i32_0 : i32, i32
  }
  func.func @transform_4(%arg0: i32) -> (i32, i32) {
    %c0_i32 = arith.constant 0 : i32
    %c0_i32_0 = arith.constant 0 : i32
    %c0_i32_1 = arith.constant 0 : i32
    return %c0_i32, %c0_i32_0 : i32, i32
  }
  func.func @transform_5(%arg0: i32) -> (i32, i32) {
    %c0_i32 = arith.constant 0 : i32
    %c0_i32_0 = arith.constant 0 : i32
    %c0_i32_1 = arith.constant 0 : i32
    return %c0_i32, %c0_i32_0 : i32, i32
  }
  func.func @transform_6(%arg0: i32) -> (i32, i32) {
    %c0_i32 = arith.constant 0 : i32
    %c0_i32_0 = arith.constant 0 : i32
    %c0_i32_1 = arith.constant 0 : i32
    return %c0_i32, %c0_i32_0 : i32, i32
  }
  func.func @transform_7(%arg0: i32) -> (i32, i32) {
    %c0_i32 = arith.constant 0 : i32
    %c0_i32_0 = arith.constant 0 : i32
    %c0_i32_1 = arith.constant 0 : i32
    return %c0_i32, %c0_i32_0 : i32, i32
  }
  func.func @transform_8(%arg0: i32) -> (i32, i32) {
    %c0_i32 = arith.constant 0 : i32
    %c0_i32_0 = arith.constant 0 : i32
    %c0_i32_1 = arith.constant 0 : i32
    return %c0_i32, %c0_i32_0 : i32, i32
  }
  func.func @transform_9(%arg0: i32) -> (i32, i32) {
    %c0_i32 = arith.constant 0 : i32
    %c0_i32_0 = arith.constant 0 : i32
    %c0_i32_1 = arith.constant 0 : i32
    return %c0_i32, %c0_i32_0 : i32, i32
  }
  func.func @transform_10(%arg0: i32) -> (i32, i32) {
    %c0_i32 = arith.constant 0 : i32
    %c0_i32_0 = arith.constant 0 : i32
    return %c0_i32, %arg0 : i32, i32
  }
}

</mosaic_0001>

<bundles_post_ra>
// kernel: tpu_custom_call.1
= control target key start
LH: loop header
LB: loop body
LE: loop exit
PB: predicated region body
PF: predicated region fallthrough
CT: control target
= control target key end

     0   :  { %s1420_s0 = inlined_call_operand.vmem [shape: bf16[16,256], index: 0, kind: input, shape index: {}]   ;;  %s1421_s1 = inlined_call_operand.vmem [shape: bf16[32,16], index: 1, kind: input, shape index: {}]   ;;  %s1422_s2 = inlined_call_operand.vmem [shape: f32[32,1], index: 2, kind: input, shape index: {}]   ;;  %s1423_s3 = inlined_call_operand.vmem [shape: bf16[32,32], index: 3, kind: input, shape index: {}]   ;;  %s1424_s4 = inlined_call_operand.vmem [shape: f32[32,1], index: 4, kind: input, shape index: {}]   ;;  %s1425_s5 = inlined_call_operand.vmem [shape: bf16[8,32], index: 5, kind: input, shape index: {}]   ;;  %s1426_s6 = inlined_call_operand.vmem [shape: f32[8,1], index: 6, kind: input, shape index: {}]   ;;  %s1427_s7 = inlined_call_operand.vmem [shape: f32[3,8], index: 7, kind: input, shape index: {}]   ;;  %s1428_s8 = inlined_call_operand.vmem [shape: f32[3,8], index: 8, kind: input, shape index: {}]   ;;  %s1429_s9 = inlined_call_operand.vmem [shape: f32[3,8], index: 9, kind: input, shape index: {}]   ;;  %s1430_s10 = inlined_call_operand.hbm [shape: f32[8,256], index: 10, kind: output, shape index: {}]  }
   0x1   :  { %1433 = sst [smem:[#allocation6_spill]] %s1420_s0 }
   0x2   :  { %15 = vsyncpa [#allocation4], 0 }
   0x3   :  { %17 = vsyncpa [#allocation4 + $0x1], 0  ;;  %s1213_s13 = smov 0   ;;  %s1215_s14 = smov 0  }
   0x4   :  { %s1217_s15 = smov 0   ;;  %s1219_s16 = smov 0  }
   0x5 LB: > { %s964_s17 = sadd.s32 4294967295, %s1152_s16   ;;  %s965_s18 = sadd.s32 4294967294, %s1152_s16   ;;  %s1152_s16 = sphi %s1219_s16, %s1442_s16   ;;  %s1148_s15 = sphi %s1217_s15, %s1441_s15   ;;  %s1144_s14 = sphi %s1215_s14, %s1440_s14   ;;  %s1140_s13 = sphi %s1213_s13, %s1439_s13  }
   0x6   : > { %s1236_s19 = sadd.s32 1, %s1152_s16   ;;  %s30_s20 = sadd.s32 1, %s1148_s15 }
   0x7   : > { %s27_s21 = ssub.s32 %s1152_s16, %s1236_s19  ;;  %p37_p0 = scmp.ne.s32.totalorder %s1148_s15, %s1144_s14 }
   0x8   : > { %p28_p1 = scmp.eq.s32.totalorder %s27_s21, 0  ;;  %p38_p2 = scmp.eq.s32.totalorder %s1152_s16, 0 }
   0x9   : > { %p256_p3 = scmp.eq.s32.totalorder %s964_s17, 1  ;;  %p261_p4 = scmp.ne.s32.totalorder %s1144_s14, %s1140_s13 }
   0xa   : > { %s1249_s22 = scalar_select %p28_p1, %s1148_s15, %s30_s20  }
   0xb   : > { %p39_p5 = por %p38_p2, %p37_p0  ;;  %p1251_p6 = por %p256_p3, %p37_p0 }
   0xc   : > { %p262_p7 = scmp.eq.s32.totalorder %s965_s18, 1  ;;  %p1432_p9 = scmp.ge.s32.totalorder %s1152_s16, 2 }
   0xe   : > { %p1255_p8 = por %p262_p7, %p261_p4  ;;  %305 = sbr.rel (%p1432_p9) target bundleno = 30 (0x1e), region = 52 }
  0x13   : > { %308 = sbr.rel (!%p39_p5) target bundleno = 30 (0x1e), region = 56  ;;  %s310_s25 = sand.u32 (%p39_p5), 1, %s1148_s15  }
  0x14   : > { %s969_s26 = sshll.u32 (%p39_p5), %s1152_s16, 2  ;;  %s968_s27 = sshll.u32 (%p39_p5), %s310_s25, 3 }
  0x15   : > { %s1436_s0 = sld [smem:[#allocation6_spill]] (%p39_p5)  ;;  %s312_s11 = scalar_lea.vmem (%p39_p5), [#allocation2], %s968_s27 }
  0x1b   : > { %s314_s30 = scalar_lea.vmem %s1436_s0, %s969_s26 }
  0x1c   : > { %v331_v0 = vld [vmem:[%s314_s30] sm:$0xf]  ;;  %v333_v1 = vld [vmem:[%s314_s30 + $0x8] sm:$0xf] }
  0x1d   : > { %332 = vst [vmem:[%s312_s11] sm:$0xf] %v331_v0  ;;  %334 = vst [vmem:[%s312_s11 + $0x4] sm:$0xf] %v333_v1 }
  0x1e PF: > { %p970_p10 = scmp.ge.s32.totalorder %s1152_s16, 1  ;;  %p361_p11 = scmp.lt.s32.totalorder %s1152_s16, 3 }
  0x20   : > { %p362_p12 = pnand %p970_p10, %p361_p11 }
  0x21   : > { %s1431_s12 = sand.u32 (!%p362_p12), 1, %s1144_s14   ;;  %s1437_s25 = sand.u32 (!%p362_p12), 1, %s1144_s14  }
  0x22   : > { %365 = sbr.rel (%p362_p12) target bundleno = 821 (0x335), region = 97  ;;  %s1275_s21 = sshll.u32 (!%p362_p12), %s1431_s12, 3 }
  0x23   : > { %s370_s27 = scalar_lea.vmem (!%p362_p12), [#allocation2], %s1275_s21  ;;  %s984_s12 = sshll.u32 (!%p362_p12), %s964_s17, 7 }
  0x24   : > { %s404_s29 = scalar_lea.vmem (!%p362_p12), [#allocation3], %s1275_s21  ;;  %s898_s20 = scalar_lea.hbm (!%p362_p12), %s1430_s10, %s984_s12 }
  0x25   : > { %s900_s30 = sshll.u32 (!%p362_p12), %s404_s29, 4  ;;  %s887_s26 = scalar_lea.sflag (!%p362_p12), [#allocation4], %s1437_s25  ;;  %s901_s30 = int_to_ptr.vmem [resolvable:$true] %s900_s30 }
  0x26   : > { %s1157_s28 = smov (!%p362_p12), [#allocation3]  }
  0x27   : > { %v1064_v2 = vld [vmem:[%s1421_s1] sm:$0xff]   ;;  %vm452_vm0 = vcmask 130048   ;;  %v414_v3 = vld [vmem:[%s1422_s2 + $0x10] sm:$0xff]  ;;  %v1154_v5 = vmov 0   ;;  %v1065_v7 = vld [vmem:[%s1421_s1 + $0x8] sm:$0xff]   ;;  %vm552_vm1 = vcmask 261120   ;;  %v665_v36 = vlaneseq }
  0x28   : > { %999 = vmatprep.mubr.msk.bf16.mxu0 %vm452_vm0, %v1064_v2  ;;  %v1063_v4 = vld [vmem:[%s370_s27] sm:$0xff]   ;;  %1061 = vset.pattern.permute.xlu0 %v1154_v5  ;;  %v415_v8 = vld [vmem:[%s1422_s2 + $0x18] sm:$0xff]  ;;  %v520_v10 = vld [vmem:[%s1424_s4 + $0x10] sm:$0xff]  ;;  %v1155_v35 = vmov 0.0   ;;  %vm1156_vm2 = vmmov 0   ;;  %s1092_s27 = scalar_lea.vmem %s901_s30, 128 }
  0x29   : > { %1062 = vset.pattern.permute.xlu1 %v1154_v5  ;;  %428 = vperm.xlu0 %1061, %v414_v3   ;;  %v412_v6 = vld [vmem:[%s1422_s2] sm:$0xff]  ;;  %v413_v9 = vld [vmem:[%s1422_s2 + $0x8] sm:$0xff]  ;;  %v521_v11 = vld [vmem:[%s1424_s4 + $0x18] sm:$0xff]  ;;  %v666_v37 = vshrl.u32 %v665_v36, 7  ;;  %p1093_p13 = scmp.ne.s32.totalorder %s901_s30, %s1092_s27  ;;  %s1096_s17 = sshll.u32 %s1157_s28, 4  ;;  %s1097_s17 = int_to_ptr.vmem [resolvable:$false] %s1096_s17 }
  0x2a   : > { %997 = vmatprep.subr.bf16.mxu0 %v1063_v4  ;;  %418 = vperm.xlu1 %1062, %v412_v6   ;;  %v518_v12 = vld [vmem:[%s1424_s4] sm:$0xff]  ;;  %v519_v13 = vld [vmem:[%s1424_s4 + $0x8] sm:$0xff]  ;;  %s1098_s21 = scalar_lea.vmem %s1097_s17, 256  ;;  %p1099_p2 = scmp.lt.s32.totalorder %s901_s30, %s1097_s17 }
  0x2b   : > { %998 = vmatpush3.bf16.msra.mxu0 %v1063_v4  ;;  %v615_v14 = vld [vmem:[%s1426_s6] sm:$0xff]  ;;  %v1067_v34 = vld [vmem:[%s1423_s3 + $0x8] sm:$0xff]   ;;  %v667_v39 = vsub.s32 0, %v666_v37  ;;  %v674_v40 = vsub.s32 1, %v666_v37  ;;  %v681_v41 = vsub.s32 2, %v666_v37  ;;  %p1094_p0 = pnand %p1093_p13, %p1251_p6  ;;  %p1100_p3 = scmp.lt.s32.totalorder %s1098_s21, %s1092_s27 }
  0x2c   : > { %v1066_v15 = vld [vmem:[%s1423_s3] sm:$0xff]   ;;  %1011 = vmatprep.subr.bf16.mxu0 %v1155_v35 }
  0x2d   : > { %433 = vperm.xlu0 %1061, %v415_v8   ;;  %1007 = vmatprep.mubr.msk.bf16.mxu1 %vm552_vm1, %v1066_v15  ;;  %v664_v38 = vld [vmem:[%s1427_s7] sm:$0x7]  ;;  %p1095_p1 = pneg %p1094_p0  ;;  %p1101_p4 = por %p1100_p3, %p1099_p2 }
  0x2e   : > { %1000 = vmatmul.mubr.msk.bf16.vlgmr.msra.gmra.mxu0 %vm452_vm0, %v1065_v7  ;;  %423 = vperm.xlu1 %1062, %v413_v9   ;;  %v689_v42 = vld [vmem:[%s1428_s8] sm:$0x7]  ;;  %v668_v43 = vrot.slane %v664_v38, %v667_v39  ;;  %v675_v44 = vrot.slane %v664_v38, %v674_v40  ;;  %v682_v45 = vrot.slane %v664_v38, %v681_v41 }
  0x2f   : > { %1015 = vmatprep.mubr.msk.bf16.mxu0 %vm1156_vm2, %v1155_v35  ;;  %v693_v46 = vrot.slane %v689_v42, %v667_v39  ;;  %v707_v47 = vrot.slane %v689_v42, %v681_v41  ;;  %v700_v48 = vrot.slane %v689_v42, %v674_v40  ;;  %v614_v3 = vld [vmem:[%s1425_s5] sm:$0xf]  ;;  %p1102_p5 = pnand %p1101_p4, %p1095_p1 }
  0x30   : > { %v790_v4 = vld [vmem:[%s1429_s9] sm:$0x7] }
  0x31   : > { %534 = vperm.xlu0 %1061, %v520_v10   ;;  %v794_v5 = vrot.slane %v790_v4, %v667_v39  ;;  %v801_v6 = vrot.slane %v790_v4, %v674_v40  ;;  %v808_v7 = vrot.slane %v790_v4, %v681_v41 }
  0x32   : > { %539 = vperm.xlu1 %1062, %v521_v11  }
  0x35   : > { %524 = vperm.xlu0 %1061, %v518_v12  }
  0x36   : > { %529 = vperm.xlu1 %1062, %v519_v13  }
  0x39   : > { %618 = vperm.xlu0 %1061, %v615_v14  }
  0x3a   : > { %670 = vbcast.lane.b32.xlu1 %v668_v43, 256 }
  0x3d   : > { %677 = vbcast.lane.b32.xlu0 %v675_v44, 256 }
  0x3e   : > { %684 = vbcast.lane.b32.xlu1 %v682_v45, 256 }
  0x41   : > { %695 = vbcast.lane.b32.xlu0 %v693_v46, 256 }
  0x42   : > { %702 = vbcast.lane.b32.xlu1 %v700_v48, 256 }
  0x45   : > { %709 = vbcast.lane.b32.xlu0 %v707_v47, 256 }
  0x46   : > { %796 = vbcast.lane.b32.xlu1 %v794_v5, 256 }
  0x49   : > { %803 = vbcast.lane.b32.xlu0 %v801_v6, 256 }
  0x4a   : > { %810 = vbcast.lane.b32.xlu1 %v808_v7, 256 }
  0xa4   : > { %v429_v16 = vpop.permute.xlu0 %428 }
  0xa5   : > { %v419_v17 = vpop.permute.xlu1 %418 }
  0xa8   : > { %v434_v21 = vpop.permute.xlu0 %433 }
  0xa9   : > { %v424_v25 = vpop.permute.xlu1 %423 }
  0xac   : > { %v535_v49 = vpop.permute.xlu0 %534 }
  0xad   : > { %v540_v50 = vpop.permute.xlu1 %539 }
  0xb0   : > { %v525_v55 = vpop.permute.xlu0 %524 }
  0xb1   : > { %v530_v57 = vpop.permute.xlu1 %529 }
  0xb4   : > { %v619_v9 = vpop.permute.xlu0 %618 }
  0xb5   : > { %v1331_v8 = vpop.permute.xlu1 %670 }
  0xb6   : > { %vm686_vm5 = vcmp.ne.f32.partialorder %v1331_v8, 0.0 }
  0xb8   : > { %v1333_v10 = vpop.permute.xlu0 %677 }
  0xb9   : > { %v1335_v11 = vpop.permute.xlu1 %684  ;;  %vm687_vm3 = vcmp.ne.f32.partialorder %v1333_v10, 0.0 }
  0xba   : > { %vm688_vm4 = vcmp.ne.f32.partialorder %v1335_v11, 0.0 }
  0xee   : > { %v1001_v18 = vpop.f32.mrf.mxu0 }
  0xef   : > { %v502_v20 = vadd.f32 %v1001_v18, %v429_v16 }
  0xf0   : > { %v493_v19 = vpop.f32.mrf.mxu0 }
  0xf1   : > { %v494_v23 = vadd.f32 %v493_v19, %v419_v17  ;;  %v510_v27 = vmax.f32 %v502_v20, 0.0 }
  0xf2   : > { %v1002_v22 = vpop.f32.mrf.mxu0 }
  0xf3   : > { %v505_v24 = vadd.f32 %v1002_v22, %v434_v21  ;;  %v508_v30 = vmax.f32 %v494_v23, 0.0 }
  0xf4   : > { %v496_v26 = vpop.f32.mrf.mxu0 }
  0xf5   : > { %v511_v28 = vmax.f32 %v505_v24, 0.0  ;;  %v497_v29 = vadd.f32 %v496_v26, %v424_v25 }
  0xf7   : > { %v509_v31 = vmax.f32 %v497_v29, 0.0  ;;  %v513_v32 = vpack.c.bf16 %v511_v28, %v510_v27 }
  0xf9   : > { %v512_v33 = vpack.c.bf16 %v509_v31, %v508_v30  ;;  %1003 = vmatprep.subr.bf16.mxu1 %v513_v32 }
  0xfa   : > { %1004 = vmatpush3.bf16.msra.mxu1 %v513_v32 }
  0xfb   : > { %1005 = vmatprep.subr.bf16.mxu1 %v512_v33 }
  0xfe   : > { %1006 = vmatpush3.bf16.msra.mxu1 %v512_v33 }
 0x101   : > { %1008 = vmatmul.mubr.msk.bf16.vlgmr.msra.gmra.mxu1 %vm552_vm1, %v1067_v34 }
 0x1c1   : > { %v1009_v51 = vpop.f32.mrf.mxu1 }
 0x1c2   : > { %v602_v53 = vadd.f32 %v1009_v51, %v535_v49 }
 0x1c3   : > { %v593_v52 = vpop.f32.mrf.mxu1 }
 0x1c4   : > { %v610_v59 = vmax.f32 %v602_v53, 0.0  ;;  %v594_v60 = vadd.f32 %v593_v52, %v525_v55 }
 0x1c5   : > { %v1010_v54 = vpop.f32.mrf.mxu1 }
 0x1c6   : > { %v605_v56 = vadd.f32 %v1010_v54, %v540_v50  ;;  %v608_v1 = vmax.f32 %v594_v60, 0.0 }
 0x1c7   : > { %v596_v58 = vpop.f32.mrf.mxu1 }
 0x1c8   : > { %v611_v61 = vmax.f32 %v605_v56, 0.0  ;;  %v597_v62 = vadd.f32 %v596_v58, %v530_v57 }
 0x1ca   : > { %v613_v63 = vpack.c.bf16 %v611_v61, %v610_v59  ;;  %v609_v0 = vmax.f32 %v597_v62, 0.0 }
 0x1cc   : > { %1012 = vmatpush3.bf16.msra.mxu0 %v613_v63  ;;  %v612_v2 = vpack.c.bf16 %v609_v0, %v608_v1 }
 0x1cd   : > { %1013 = vmatprep.subr.bf16.mxu0 %v1155_v35 }
 0x1d0   : > { %1014 = vmatpush3.bf16.msra.mxu0 %v612_v2 }
 0x1d3   : > { %1016 = vmatmul.mubr.msk.bf16.vlgmr.msra.gmra.mxu0 %vm552_vm1, %v614_v3 }
 0x293   : > { %v658_v12 = vpop.f32.mrf.mxu0 }
 0x294   : > { %v1337_v13 = vadd.f32 %v658_v12, %v619_v9 }
 0x295   : > { %v1017_v14 = vpop.f32.mrf.mxu0 }
 0x296   : > { %v711_v15 = vmul.f32 %v1331_v8, %v1337_v13  ;;  %v712_v16 = vmul.f32 %v1333_v10, %v1337_v13  ;;  %v713_v17 = vmul.f32 %v1335_v11, %v1337_v13  ;;  %v696_v14 = vpop.permute.xlu0 %695 }
 0x297   : > { %v661_v18 = vpop.f32.mrf.mxu0 }
 0x298   : > { %v720_v19 = vsel %vm686_vm5, %v711_v15, -1e+30  ;;  %v721_v20 = vsel %vm687_vm3, %v712_v16, -1e+30  ;;  %v722_v21 = vsel %vm688_vm4, %v713_v17, -1e+30  ;;  %v703_v18 = vpop.permute.xlu1 %702 }
 0x299   : > { %v723_v22 = vrot.slane %v720_v19, 4  ;;  %v729_v23 = vrot.slane %v721_v20, 4  ;;  %v735_v24 = vrot.slane %v722_v21, 4  ;;  %v1018_v25 = vpop.f32.mrf.mxu0 }
 0x29b   : > { %v724_v26 = vmax.f32 %v720_v19, %v723_v22  ;;  %v730_v27 = vmax.f32 %v721_v20, %v729_v23  ;;  %v736_v28 = vmax.f32 %v722_v21, %v735_v24  ;;  %v710_v22 = vpop.permute.xlu0 %709 }
 0x29d   : > { %v725_v29 = vrot.slane %v724_v26, 2  ;;  %v731_v30 = vrot.slane %v730_v27, 2  ;;  %v737_v31 = vrot.slane %v736_v28, 2 }
 0x29f   : > { %v726_v32 = vmax.f32 %v724_v26, %v725_v29  ;;  %v732_v33 = vmax.f32 %v730_v27, %v731_v30  ;;  %v738_v34 = vmax.f32 %v736_v28, %v737_v31 }
 0x2a1   : > { %v727_v35 = vrot.slane %v726_v32, 1  ;;  %v733_v36 = vrot.slane %v732_v33, 1  ;;  %v739_v37 = vrot.slane %v738_v34, 1 }
 0x2a3   : > { %v728_v38 = vmax.f32 %v726_v32, %v727_v35  ;;  %v734_v39 = vmax.f32 %v732_v33, %v733_v36  ;;  %v740_v40 = vmax.f32 %v738_v34, %v739_v37 }
 0x2a5   : > { %v741_v41 = vsub.f32 %v720_v19, %v728_v38  ;;  %v742_v42 = vsub.f32 %v721_v20, %v734_v39  ;;  %v743_v43 = vsub.f32 %v722_v21, %v740_v40 }
 0x2a7   : > { %v744_v44 = vmul.f32 1.442695, %v741_v41  ;;  %v746_v45 = vmul.f32 1.442695, %v742_v42  ;;  %v748_v46 = vmul.f32 1.442695, %v743_v43 }
 0x2a9   : > { %1068 = vpow2.f32 %v744_v44 }
 0x2aa   : > { %1070 = vpow2.f32 %v746_v45 }
 0x2ab   : > { %1072 = vpow2.f32 %v748_v46 }
 0x2b6   : > { %v1069_v47 = vpop.eup %1068 }
 0x2b7   : > { %v1071_v48 = vpop.eup %1070  ;;  %v750_v49 = vsel %vm686_vm5, %v1069_v47, 0.0 }
 0x2b8   : > { %v1073_v50 = vpop.eup %1072  ;;  %v753_v51 = vrot.slane %v750_v49, 4  ;;  %v751_v52 = vsel %vm687_vm3, %v1071_v48, 0.0 }
 0x2b9   : > { %v752_v53 = vsel %vm688_vm4, %v1073_v50, 0.0  ;;  %v759_v54 = vrot.slane %v751_v52, 4 }
 0x2ba   : > { %v754_v55 = vadd.f32 %v753_v51, %v750_v49  ;;  %v765_v56 = vrot.slane %v752_v53, 4 }
 0x2bb   : > { %v760_v57 = vadd.f32 %v759_v54, %v751_v52 }
 0x2bc   : > { %v755_v58 = vrot.slane %v754_v55, 2  ;;  %v766_v59 = vadd.f32 %v765_v56, %v752_v53 }
 0x2bd   : > { %v761_v60 = vrot.slane %v760_v57, 2 }
 0x2be   : > { %v756_v61 = vadd.f32 %v755_v58, %v754_v55  ;;  %v767_v62 = vrot.slane %v766_v59, 2 }
 0x2bf   : > { %v762_v63 = vadd.f32 %v761_v60, %v760_v57 }
 0x2c0   : > { %v757_v0 = vrot.slane %v756_v61, 1  ;;  %v768_v1 = vadd.f32 %v767_v62, %v766_v59 }
 0x2c1   : > { %v763_v2 = vrot.slane %v762_v63, 1 }
 0x2c2   : > { %v758_v3 = vadd.f32 %v757_v0, %v756_v61  ;;  %v769_v4 = vrot.slane %v768_v1, 1 }
 0x2c3   : > { %v764_v5 = vadd.f32 %v763_v2, %v762_v63 }
 0x2c4   : > { %vm771_vm6 = vcmp.gt.f32.partialorder %v758_v3, 0.0  ;;  %v770_v6 = vadd.f32 %v769_v4, %v768_v1 }
 0x2c5   : > { %v774_v7 = vsel %vm771_vm6, %v758_v3, 1.0  ;;  %vm772_vm7 = vcmp.gt.f32.partialorder %v764_v5, 0.0 }
 0x2c6   : > { %1074 = vrcp.f32 %v774_v7  ;;  %vm773_vm8 = vcmp.gt.f32.partialorder %v770_v6, 0.0  ;;  %v775_v9 = vsel %vm772_vm7, %v764_v5, 1.0 }
 0x2c7   : > { %v776_v12 = vsel %vm773_vm8, %v770_v6, 1.0  ;;  %1076 = vrcp.f32 %v775_v9 }
 0x2c8   : > { %1078 = vrcp.f32 %v776_v12 }
 0x2d3   : > { %v1075_v15 = vpop.eup %1074 }
 0x2d4   : > { %v1077_v16 = vpop.eup %1076  ;;  %v780_v17 = vmul.f32 %v1075_v15, %v750_v49 }
 0x2d5   : > { %v1079_v19 = vpop.eup %1078  ;;  %v781_v20 = vmul.f32 %v1077_v16, %v751_v52 }
 0x2d6   : > { %v783_v21 = vmul.f32 %v780_v17, %v696_v14  ;;  %v782_v23 = vmul.f32 %v1079_v19, %v752_v53 }
 0x2d7   : > { %v784_v24 = vmul.f32 %v781_v20, %v703_v18 }
 0x2d8   : > { %v785_v25 = vmul.f32 %v782_v23, %v710_v22  ;;  %v797_v22 = vpop.permute.xlu1 %796 }
 0x2d9   : > { %v786_v26 = vadd.f32 %v784_v24, %v783_v21 }
 0x2db   : > { %v787_v27 = vadd.f32 %v786_v26, %v785_v25  ;;  %v804_v26 = vpop.permute.xlu0 %803 }
 0x2dd   : > { %v1361_v28 = vadd.f32 %v787_v27, %v1337_v13 }
 0x2df   : > { %v812_v29 = vmul.f32 %v1361_v28, %v1331_v8  ;;  %v813_v30 = vmul.f32 %v1361_v28, %v1333_v10  ;;  %v814_v31 = vmul.f32 %v1361_v28, %v1335_v11 }
 0x2e1   : > { %v815_v32 = vsel %vm686_vm5, %v812_v29, -1e+30  ;;  %v816_v33 = vsel %vm687_vm3, %v813_v30, -1e+30  ;;  %v817_v34 = vsel %vm688_vm4, %v814_v31, -1e+30  ;;  %v811_v31 = vpop.permute.xlu1 %810 }
 0x2e2   : > { %v818_v13 = vrot.slane %v815_v32, 4  ;;  %v824_v35 = vrot.slane %v816_v33, 4  ;;  %v830_v36 = vrot.slane %v817_v34, 4 }
 0x2e4   : > { %v819_v37 = vmax.f32 %v815_v32, %v818_v13  ;;  %v825_v38 = vmax.f32 %v816_v33, %v824_v35  ;;  %v831_v39 = vmax.f32 %v817_v34, %v830_v36 }
 0x2e6   : > { %v820_v40 = vrot.slane %v819_v37, 2  ;;  %v826_v41 = vrot.slane %v825_v38, 2  ;;  %v832_v42 = vrot.slane %v831_v39, 2 }
 0x2e8   : > { %v821_v43 = vmax.f32 %v819_v37, %v820_v40  ;;  %v827_v44 = vmax.f32 %v825_v38, %v826_v41  ;;  %v833_v45 = vmax.f32 %v831_v39, %v832_v42 }
 0x2ea   : > { %v822_v46 = vrot.slane %v821_v43, 1  ;;  %v828_v47 = vrot.slane %v827_v44, 1  ;;  %v834_v48 = vrot.slane %v833_v45, 1 }
 0x2ec   : > { %v823_v49 = vmax.f32 %v821_v43, %v822_v46  ;;  %v829_v50 = vmax.f32 %v827_v44, %v828_v47  ;;  %v835_v51 = vmax.f32 %v833_v45, %v834_v48 }
 0x2ee   : > { %v836_v52 = vsub.f32 %v815_v32, %v823_v49  ;;  %v837_v53 = vsub.f32 %v816_v33, %v829_v50  ;;  %v838_v54 = vsub.f32 %v817_v34, %v835_v51 }
 0x2f0   : > { %v839_v55 = vmul.f32 1.442695, %v836_v52  ;;  %v841_v56 = vmul.f32 1.442695, %v837_v53  ;;  %v843_v57 = vmul.f32 1.442695, %v838_v54 }
 0x2f2   : > { %1080 = vpow2.f32 %v839_v55 }
 0x2f3   : > { %1082 = vpow2.f32 %v841_v56 }
 0x2f4   : > { %1084 = vpow2.f32 %v843_v57 }
 0x2ff   : > { %v1081_v58 = vpop.eup %1080 }
 0x300   : > { %v1083_v59 = vpop.eup %1082  ;;  %v845_v60 = vsel %vm686_vm5, %v1081_v58, 0.0 }
 0x301   : > { %v1085_v61 = vpop.eup %1084  ;;  %v848_v62 = vrot.slane %v845_v60, 4  ;;  %v846_v63 = vsel %vm687_vm3, %v1083_v59, 0.0 }
 0x302   : > { %v854_v0 = vrot.slane %v846_v63, 4  ;;  %v847_v1 = vsel %vm688_vm4, %v1085_v61, 0.0 }
 0x303   : > { %v849_v2 = vadd.f32 %v848_v62, %v845_v60  ;;  %v860_v3 = vrot.slane %v847_v1, 4 }
 0x304   : > { %v855_v4 = vadd.f32 %v854_v0, %v846_v63 }
 0x305   : > { %v850_v5 = vrot.slane %v849_v2, 2  ;;  %v861_v6 = vadd.f32 %v860_v3, %v847_v1 }
 0x306   : > { %v856_v7 = vrot.slane %v855_v4, 2 }
 0x307   : > { %v851_v9 = vadd.f32 %v850_v5, %v849_v2  ;;  %v862_v12 = vrot.slane %v861_v6, 2 }
 0x308   : > { %v857_v14 = vadd.f32 %v856_v7, %v855_v4 }
 0x309   : > { %v852_v8 = vrot.slane %v851_v9, 1  ;;  %v863_v15 = vadd.f32 %v862_v12, %v861_v6 }
 0x30a   : > { %v858_v16 = vrot.slane %v857_v14, 1 }
 0x30b   : > { %v853_v17 = vadd.f32 %v852_v8, %v851_v9  ;;  %v864_v18 = vrot.slane %v863_v15, 1 }
 0x30c   : > { %v859_v10 = vadd.f32 %v858_v16, %v857_v14 }
 0x30d   : > { %vm866_vm9 = vcmp.gt.f32.partialorder %v853_v17, 0.0  ;;  %v865_v19 = vadd.f32 %v864_v18, %v863_v15 }
 0x30e   : > { %v869_v20 = vsel %vm866_vm9, %v853_v17, 1.0  ;;  %vm867_vm10 = vcmp.gt.f32.partialorder %v859_v10, 0.0 }
 0x30f   : > { %1086 = vrcp.f32 %v869_v20  ;;  %v870_v11 = vsel %vm867_vm10, %v859_v10, 1.0  ;;  %vm868_vm11 = vcmp.gt.f32.partialorder %v865_v19, 0.0 }
 0x310   : > { %1088 = vrcp.f32 %v870_v11  ;;  %v871_v21 = vsel %vm868_vm11, %v865_v19, 1.0 }
 0x311   : > { %1090 = vrcp.f32 %v871_v21 }
 0x31c   : > { %v1087_v23 = vpop.eup %1086 }
 0x31d   : > { %v1089_v24 = vpop.eup %1088  ;;  %v875_v25 = vmul.f32 %v1087_v23, %v845_v60 }
 0x31e   : > { %v1091_v27 = vpop.eup %1090  ;;  %v876_v29 = vmul.f32 %v1089_v24, %v846_v63 }
 0x31f   : > { %v878_v30 = vmul.f32 %v875_v25, %v797_v22  ;;  %v877_v32 = vmul.f32 %v1091_v27, %v847_v1 }
 0x320   : > { %v879_v33 = vmul.f32 %v876_v29, %v804_v26 }
 0x321   : > { %v880_v13 = vmul.f32 %v877_v32, %v811_v31 }
 0x322   : > { %v881_v34 = vadd.f32 %v879_v33, %v878_v30 }
 0x324   : > { %v882_v35 = vadd.f32 %v881_v34, %v880_v13 }
 0x326   : > { %v884_v36 = vadd.f32 %v882_v35, %v1361_v28 }
 0x328   : > { %885 = vst [vmem:[%s404_s29] sm:$0xff] %v884_v36 }
 0x329   : > { %1105 = shalt.err (!%p1102_p5)
}
 0x32a   : > { %s1106_s11 = scalar_lea.hbm %s898_s20, 128  ;;  %s1110_s18 = scalar_lea.hbm %s1430_s10, 256 }
 0x32b   : > { %p1107_p7 = scmp.ne.s32.totalorder %s898_s20, %s1106_s11  ;;  %p1111_p12 = scmp.lt.s32.totalorder %s898_s20, %s1430_s10 }
 0x32c   : > { %p1112_p13 = scmp.lt.s32.totalorder %s1110_s18, %s1106_s11 }
 0x32d   : > { %p1108_p10 = pnand %p1107_p7, %p1251_p6 }
 0x32e   : > { %p1113_p0 = por %p1112_p13, %p1111_p12 }
 0x32f   : > { %p1109_p11 = pneg %p1108_p10 }
 0x331   : > { %p1114_p9 = pnand %p1113_p0, %p1109_p11 }
 0x333   : > { %1117 = shalt.err (!%p1114_p9)
}
 0x334   : > { %1019 = dma.vmem_to_hbm [thread:$0]  (%p1251_p6), %s901_s30, 128, %s898_s20, %s887_s26  }
 0x335 PF: > { %s912_s27 = sand.u32 1, %s1140_s13   ;;  %p1438_p1 = scmp.ge.s32.totalorder %s1152_s16, 2 }
 0x336   : > { %s913_s28 = scalar_lea.sflag [#allocation4], %s912_s27 }
 0x337   : > { %p1022_p2 = pnand %p1438_p1, %p1255_p8 }
 0x339   : > { %p1023_p3 = pneg %p1022_p2 }
 0x33b   : > { %1135 = dma.done.wait (%p1023_p3), %s913_s28, 128  }
 0x33c   : > { %1137 = vsyncadd (%p1023_p3), %s913_s28, 4294967168  ;;  %p20_p9 = scmp.ge.s32.totalorder %s1236_s19, 4   ;;  %s1439_s13 = smov %s1144_s14 }
 0x33d   : > { %s1440_s14 = smov %s1148_s15  ;;  %s1441_s15 = smov %s1249_s22 }
 0x33e   : > { %s1442_s16 = smov %s1236_s19  ;;  %22 = sbr.rel (!%p20_p9) target bundleno = 5 (0x5), region = 141 }
 0x343   :  { %918 = vsyncpa [#allocation4], 1 }
 0x344   :  { %920 = vsyncpa [#allocation4 + $0x1], 1 }

</bundles_post_ra>
